<compile_context>
chip_gen: v5e
topology: v5e:2x2
jax: 0.10.0
libtpu: 0.0.40
codegen_flags: <defaults>
</compile_context>

<pallas_src>
import functools

import jax
import jax.numpy as jnp
from jax.experimental import pallas as pl
from jax.experimental.pallas import tpu as pltpu


def _round_up(n, m):
    return ((n + m - 1) // m) * m


def mlp_kernel(x_ref, w1_ref, b1_ref, w2_ref, b2_ref, o_ref):
    # Cast activations to the weight compute dtype (no-op if x is already bf16).
    x = x_ref[...].astype(w1_ref.dtype)
    # Hidden layer: (tm, 784) bf16 @ (784, 256) bf16 -> f32; bias + ReLU in f32.
    h = jnp.dot(x, w1_ref[...], preferred_element_type=jnp.float32)
    h = jnp.maximum(h + b1_ref[...], 0.0)
    # Output layer: (tm, 256) bf16 @ (256, 128) bf16 -> f32; bias in f32.
    out = jnp.dot(h.astype(w2_ref.dtype), w2_ref[...],
                  preferred_element_type=jnp.float32)
    o_ref[...] = (out + b2_ref[...]).astype(o_ref.dtype)


def prepare_params(w1, b1, w2, b2, *, compute_dtype=jnp.bfloat16):
    """One-time weight prep: bf16 cast + lane-dense padding of the output layer.

    w1: (784, 256), b1: (256,), w2: (256, 10), b2: (10,)
    Returns (w1p, b1p, w2p, b2p, out_dim) with w2p/b2p padded to 128 lanes.
    """
    hid = w1.shape[1]
    out_dim = w2.shape[1]
    out_pad = _round_up(out_dim, 128)  # 10 -> 128
    w1p = w1.astype(compute_dtype)                                   # (784, 256)
    b1p = b1.astype(jnp.float32).reshape(1, hid)                     # (1, 256)
    w2p = jnp.zeros((hid, out_pad), compute_dtype)
    w2p = w2p.at[:, :out_dim].set(w2.astype(compute_dtype))          # (256, 128)
    b2p = jnp.zeros((1, out_pad), jnp.float32)
    b2p = b2p.at[:, :out_dim].set(b2.astype(jnp.float32).reshape(1, out_dim))
    return w1p, b1p, w2p, b2p, out_dim


@functools.partial(jax.jit, static_argnames=("out_dim", "tm"))
def mlp_forward(x, w1p, b1p, w2p, b2p, *, out_dim=10, tm=512):
    """y = relu(x @ w1 + b1) @ w2 + b2, fused in one Pallas kernel.

    x: (B, 784), bf16 (preferred, cast upstream) or f32.
    w1p/b1p/w2p/b2p: outputs of prepare_params().
    Returns (B, out_dim) bf16 logits.
    """
    B, in_dim = x.shape
    hid = w1p.shape[1]
    out_pad = w2p.shape[1]

    # Batch tile: multiple of 16 (bf16 sublane packing); never bigger than the
    # (rounded-up) batch, and split into >=2 tiles when the batch is big enough
    # so the "parallel" grid axis can use both TensorCores on v7x.
    tm = max(16, min(tm, _round_up(B, 16)))
    if B >= 32:
        tm = min(tm, max(16, _round_up((B + 1) // 2, 16)))

    grid = (pl.cdiv(B, tm),)
    out = pl.pallas_call(
        mlp_kernel,
        out_shape=jax.ShapeDtypeStruct((B, out_pad), jnp.bfloat16),
        grid_spec=pltpu.PrefetchScalarGridSpec(
            num_scalar_prefetch=0,
            grid=grid,
            in_specs=[
                # Activations stream per batch tile; full (unpadded) K=784.
                pl.BlockSpec((tm, in_dim), lambda i: (i, 0)),
                # Weights / biases: constant index -> resident in VMEM.
                pl.BlockSpec((in_dim, hid), lambda i: (0, 0)),
                pl.BlockSpec((1, hid), lambda i: (0, 0)),
                pl.BlockSpec((hid, out_pad), lambda i: (0, 0)),
                pl.BlockSpec((1, out_pad), lambda i: (0, 0)),
            ],
            out_specs=pl.BlockSpec((tm, out_pad), lambda i: (i, 0)),
        ),
        compiler_params=pltpu.CompilerParams(
            dimension_semantics=("parallel",)),
    )(x, w1p, b1p, w2p, b2p)

    # Drop the output-lane padding (and nothing else: batch is exact-size).
    return out[:, :out_dim]


def init_params(key):
    # Deterministic init mimicking PyTorch nn.Linear default:
    # U(-1/sqrt(fan_in), 1/sqrt(fan_in)) for both weight and bias.
    k1, k2, k3, k4 = jax.random.split(key, 4)
    in1, hid, out = 784, 256, 10
    bnd1 = 1.0 / jnp.sqrt(in1)
    bnd2 = 1.0 / jnp.sqrt(hid)
    w1 = jax.random.uniform(k1, (in1, hid), jnp.float32, -bnd1, bnd1)
    b1 = jax.random.uniform(k2, (hid,), jnp.float32, -bnd1, bnd1)
    w2 = jax.random.uniform(k3, (hid, out), jnp.float32, -bnd2, bnd2)
    b2 = jax.random.uniform(k4, (out,), jnp.float32, -bnd2, bnd2)
    return w1, b1, w2, b2


if __name__ == "__main__":
    key = jax.random.PRNGKey(0)
    kx, kp = jax.random.split(key)
    B = 8
    x = jax.random.normal(kx, (B, 784), jnp.float32)
    w1, b1, w2, b2 = init_params(kp)

    # One-time weight prep + upstream activation cast (outside the hot path).
    w1p, b1p, w2p, b2p, out_dim = prepare_params(w1, b1, w2, b2)
    x_bf16 = x.astype(jnp.bfloat16)

    y = mlp_forward(x_bf16, w1p, b1p, w2p, b2p, out_dim=out_dim)
    jax.block_until_ready(y)

    # Pure-JAX f32 reference (kernel uses bf16 x/weights/output -> loose tol).
    ref = jnp.maximum(x @ w1 + b1, 0.0) @ w2 + b2
    assert y.shape == (B, 10), y.shape
    err = jnp.max(jnp.abs(y.astype(jnp.float32) - ref))
    assert jnp.allclose(y.astype(jnp.float32), ref, atol=5e-2, rtol=5e-2), float(err)
    print("KERNEL_OK")
</pallas_src>

<mosaic_0001>
module attributes {stable_mosaic.version = 11 : i64} {
  func.func @mlp_kernel(%arg0: i32, %arg1: memref<16x784xbf16, #tpu.memory_space<vmem>>, %arg2: memref<784x256xbf16, #tpu.memory_space<vmem>>, %arg3: memref<1x256xf32, #tpu.memory_space<vmem>>, %arg4: memref<256x128xbf16, #tpu.memory_space<vmem>>, %arg5: memref<1x128xf32, #tpu.memory_space<vmem>>, %arg6: memref<16x128xbf16, #tpu.memory_space<vmem>>) attributes {dimension_semantics = [#tpu.dimension_semantics<parallel>], iteration_bounds = array<i64: 1>, scalar_prefetch = 0 : i64, scratch_operands = 0 : i64, tpu.core_type = #tpu.core_type<tc>, window_params = [{transform_indices = @transform_0, window_bounds = array<i64: 16, 784>}, {pipeline_mode = #tpu.pipeline_mode<synchronous>, transform_indices = @transform_1, window_bounds = array<i64: 784, 256>}, {pipeline_mode = #tpu.pipeline_mode<synchronous>, transform_indices = @transform_2, window_bounds = array<i64: 1, 256>}, {pipeline_mode = #tpu.pipeline_mode<synchronous>, transform_indices = @transform_3, window_bounds = array<i64: 256, 128>}, {pipeline_mode = #tpu.pipeline_mode<synchronous>, transform_indices = @transform_4, window_bounds = array<i64: 1, 128>}, {transform_indices = @transform_5, window_bounds = array<i64: 16, 128>}]} {
    %c0 = arith.constant 0 : index
    %c0_0 = arith.constant 0 : index
    %0 = vector.load %arg1[%c0, %c0_0] : memref<16x784xbf16, #tpu.memory_space<vmem>>, vector<16x784xbf16>
    %c0_1 = arith.constant 0 : index
    %c0_2 = arith.constant 0 : index
    %1 = vector.load %arg2[%c0_1, %c0_2] : memref<784x256xbf16, #tpu.memory_space<vmem>>, vector<784x256xbf16>
    %cst = arith.constant dense<0.000000e+00> : vector<16x256xf32>
    %2 = tpu.matmul %0, %1, %cst {dimension_numbers = #tpu.dot_dimension_numbers<[1], [0], [0], [1], [0, 0, 1, 1], [], []>} : vector<16x784xbf16>, vector<784x256xbf16>, vector<16x256xf32> -> vector<16x256xf32>
    %c0_3 = arith.constant 0 : index
    %c0_4 = arith.constant 0 : index
    %3 = vector.load %arg3[%c0_3, %c0_4] : memref<1x256xf32, #tpu.memory_space<vmem>>, vector<1x256xf32>
    %4 = vector.broadcast %3 : vector<1x256xf32> to vector<16x256xf32>
    %5 = arith.addf %2, %4 : vector<16x256xf32>
    %cst_5 = arith.constant 0.000000e+00 : f32
    %6 = vector.broadcast %cst_5 : f32 to vector<16x256xf32>
    %7 = arith.maximumf %5, %6 : vector<16x256xf32>
    %8 = arith.truncf %7 : vector<16x256xf32> to vector<16x256xbf16>
    %c0_6 = arith.constant 0 : index
    %c0_7 = arith.constant 0 : index
    %9 = vector.load %arg4[%c0_6, %c0_7] : memref<256x128xbf16, #tpu.memory_space<vmem>>, vector<256x128xbf16>
    %cst_8 = arith.constant dense<0.000000e+00> : vector<16x128xf32>
    %10 = tpu.matmul %8, %9, %cst_8 {dimension_numbers = #tpu.dot_dimension_numbers<[1], [0], [0], [1], [0, 0, 1, 1], [], []>} : vector<16x256xbf16>, vector<256x128xbf16>, vector<16x128xf32> -> vector<16x128xf32>
    %c0_9 = arith.constant 0 : index
    %c0_10 = arith.constant 0 : index
    %11 = vector.load %arg5[%c0_9, %c0_10] : memref<1x128xf32, #tpu.memory_space<vmem>>, vector<1x128xf32>
    %12 = vector.broadcast %11 : vector<1x128xf32> to vector<16x128xf32>
    %13 = arith.addf %10, %12 : vector<16x128xf32>
    %14 = arith.truncf %13 : vector<16x128xf32> to vector<16x128xbf16>
    %c0_11 = arith.constant 0 : index
    %c0_12 = arith.constant 0 : index
    %15 = vector.load %arg6[%c0_11, %c0_12] : memref<16x128xbf16, #tpu.memory_space<vmem>>, vector<16x128xbf16>
    tpu.vector_store %arg6[%c0_11, %c0_12], %14 {strides = array<i32>} : memref<16x128xbf16, #tpu.memory_space<vmem>>, vector<16x128xbf16>,
    return
  }
  func.func @transform_0(%arg0: i32) -> (i32, i32) {
    %c0_i32 = arith.constant 0 : i32
    %c0_i32_0 = arith.constant 0 : i32
    return %arg0, %c0_i32 : i32, i32
  }
  func.func @transform_1(%arg0: i32) -> (i32, i32) {
    %c0_i32 = arith.constant 0 : i32
    %c0_i32_0 = arith.constant 0 : i32
    %c0_i32_1 = arith.constant 0 : i32
    return %c0_i32, %c0_i32_0 : i32, i32
  }
  func.func @transform_2(%arg0: i32) -> (i32, i32) {
    %c0_i32 = arith.constant 0 : i32
    %c0_i32_0 = arith.constant 0 : i32
    %c0_i32_1 = arith.constant 0 : i32
    return %c0_i32, %c0_i32_0 : i32, i32
  }
  func.func @transform_3(%arg0: i32) -> (i32, i32) {
    %c0_i32 = arith.constant 0 : i32
    %c0_i32_0 = arith.constant 0 : i32
    %c0_i32_1 = arith.constant 0 : i32
    return %c0_i32, %c0_i32_0 : i32, i32
  }
  func.func @transform_4(%arg0: i32) -> (i32, i32) {
    %c0_i32 = arith.constant 0 : i32
    %c0_i32_0 = arith.constant 0 : i32
    %c0_i32_1 = arith.constant 0 : i32
    return %c0_i32, %c0_i32_0 : i32, i32
  }
  func.func @transform_5(%arg0: i32) -> (i32, i32) {
    %c0_i32 = arith.constant 0 : i32
    %c0_i32_0 = arith.constant 0 : i32
    return %arg0, %c0_i32 : i32, i32
  }
}

</mosaic_0001>

<bundles_post_ra>
// kernel: mlp_forward.1
= control target key start
LH: loop header
LB: loop body
LE: loop exit
PB: predicated region body
PF: predicated region fallthrough
CT: control target
= control target key end

     0   :  { %10 = vsyncpa [#allocation3], 0  ;;  %s1958_s0 = inlined_call_operand.hbm [shape: bf16[8,784], index: 0, kind: input, shape index: {}]   ;;  %s1959_s1 = inlined_call_operand.hbm [shape: bf16[784,256], index: 1, kind: input, shape index: {}]   ;;  %s1960_s2 = inlined_call_operand.hbm [shape: f32[1,256], index: 2, kind: input, shape index: {}]   ;;  %s1961_s3 = inlined_call_operand.hbm [shape: bf16[256,128], index: 3, kind: input, shape index: {}]   ;;  %s1962_s4 = inlined_call_operand.vmem [shape: f32[1,128], index: 4, kind: input, shape index: {}]   ;;  %s1963_s5 = inlined_call_operand.hbm [shape: bf16[8,128], index: 5, kind: output, shape index: {}]  }
   0x1   :  { %11 = vsyncpa [#allocation6], 0 }
   0x2   :  { %12 = vsyncpa [#allocation9], 0 }
   0x3   :  { %13 = vsyncpa [#allocation4], 0  ;;  %s31_s20 = sshll.u32 %s1959_s1, 4  ;;  %s32_s20 = int_to_ptr.hbm [resolvable:$true] %s31_s20 }
   0x4   :  { %17 = vsyncadd [#allocation3], 448  ;;  %s1863_s21 = smov [#allocation5]   ;;  %s18_s25 = sshll.u32 %s1958_s0, 4  ;;  %s19_s25 = int_to_ptr.hbm [resolvable:$true] %s18_s25 }
   0x5   :  { %s33_s22 = sshll.u32 %s1863_s21, 4  ;;  %s1864_s26 = smov 128   ;;  %s34_s22 = int_to_ptr.vmem [resolvable:$true] %s33_s22 }
   0x6   :  { %s1865_s27 = smov 8   ;;  %s1866_s28 = smov [#allocation2]  }
   0x7   :  { %39 = dma.hbm_to_vmem [thread:$0]  %s32_s20, 12544, %s34_s22, [#allocation6], %s1864_s26, %s1864_s26, %s1865_s27  }
   0x8   :  { %s20_s29 = sshll.u32 %s1866_s28, 4  ;;  %s1867_s30 = smov 448   ;;  %s21_s29 = int_to_ptr.vmem [resolvable:$true] %s20_s29 }
   0x9   :  { %s1868_s6 = smov 28   ;;  %s45_s8 = sshll.u32 %s1960_s2, 4  ;;  %s46_s8 = int_to_ptr.hbm [resolvable:$true] %s45_s8 }
   0xa   :  { %26 = dma.hbm_to_vmem [thread:$0]  %s19_s25, 448, %s21_s29, [#allocation3], %s1867_s30, %s1867_s30, %s1868_s6  }
   0xb   :  { %s1869_s9 = smov [#allocation7]   ;;  %s55_s12 = sshll.u32 %s1961_s3, 4  ;;  %s56_s12 = int_to_ptr.hbm [resolvable:$true] %s55_s12 }
   0xc   :  { %s47_s10 = sshll.u32 %s1869_s9, 4  ;;  %s1870_s13 = smov [#allocation8]   ;;  %s48_s10 = int_to_ptr.vmem [resolvable:$true] %s47_s10 }
   0xd   :  { %50 = dma.hbm_to_vmem [thread:$0]  %s46_s8, 32, %s48_s10, [#allocation6]  }
   0xe   :  { %s57_s14 = sshll.u32 %s1870_s13, 4  ;;  %s1871_s15 = smov 64   ;;  %s58_s14 = int_to_ptr.vmem [resolvable:$true] %s57_s14 }
   0xf   :  { %s1872_s16 = smov 4  }
  0x10   :  { %63 = dma.hbm_to_vmem [thread:$0]  %s56_s12, 2048, %s58_s14, [#allocation9], %s1871_s15, %s1871_s15, %s1872_s16  }
  0x11   :  { %1855 = dma.done.wait [#allocation3], 896  }
  0x12   :  { %1856 = vsyncadd [#allocation3], 4294966400 }
  0x13   :  { %1857 = dma.done.wait [#allocation6], 12576  }
  0x14   :  { %1858 = vsyncadd [#allocation6], 4294954720 }
  0x15   :  { %1859 = dma.done.wait [#allocation9], 2048  }
  0x16   :  { %1860 = vsyncadd [#allocation9], 4294965248  ;;  %v1197_v0 = vld [vmem:[#allocation5 + $0x70] sm:$0xf]  ;;  %v1619_v1 = vld [vmem:[#allocation5 + $0x74] sm:$0xf0] }
  0x17   :  { %v1325_v2 = vld [vmem:[#allocation5 + $0x170] sm:$0xf]  ;;  %v1198_v3 = vor.u32 %v1619_v1, %v1197_v0  ;;  %v1651_v4 = vld [vmem:[#allocation5 + $0x174] sm:$0xf0]  ;;  %v1189_v11 = vld [vmem:[#allocation5 + $0x60] sm:$0xf] }
  0x18   :  { %v1389_v5 = vld [vmem:[#allocation5 + $0x1f0] sm:$0xf]  ;;  %v1667_v6 = vld [vmem:[#allocation5 + $0x1f4] sm:$0xf0]  ;;  %v1326_v7 = vor.u32 %v1651_v4, %v1325_v2  ;;  %v1617_v13 = vld [vmem:[#allocation5 + $0x64] sm:$0xf0] }
  0x19   :  { %v1390_v8 = vor.u32 %v1667_v6, %v1389_v5  ;;  %v1261_v9 = vld [vmem:[#allocation5 + $0xf0] sm:$0xf]  ;;  %v1635_v10 = vld [vmem:[#allocation5 + $0xf4] sm:$0xf0]  ;;  %724 = vmatpush.bf16.msra.mxu0 %v1198_v3  ;;  %v1317_v14 = vld [vmem:[#allocation5 + $0x160] sm:$0xf]  ;;  %v1190_v16 = vor.u32 %v1617_v13, %v1189_v11 }
  0x1a   :  { %v1262_v12 = vor.u32 %v1635_v10, %v1261_v9  ;;  %v1649_v15 = vld [vmem:[#allocation5 + $0x164] sm:$0xf0]  ;;  %752 = vmatpush.bf16.msra.mxu2 %v1326_v7  ;;  %v1381_v18 = vld [vmem:[#allocation5 + $0x1e0] sm:$0xf]  ;;  %v1181_v23 = vld [vmem:[#allocation5 + $0x50] sm:$0xf] }
  0x1b   :  { %766 = vmatpush.bf16.msra.mxu3 %v1390_v8  ;;  %v1318_v17 = vor.u32 %v1649_v15, %v1317_v14  ;;  %v1665_v19 = vld [vmem:[#allocation5 + $0x1e4] sm:$0xf0]  ;;  %v1253_v20 = vld [vmem:[#allocation5 + $0xe0] sm:$0xf]  ;;  %v1615_v24 = vld [vmem:[#allocation5 + $0x54] sm:$0xf0] }
  0x1c   :  { %738 = vmatpush.bf16.msra.mxu1 %v1262_v12  ;;  %v1382_v21 = vor.u32 %v1665_v19, %v1381_v18  ;;  %v1633_v22 = vld [vmem:[#allocation5 + $0xe4] sm:$0xf0]  ;;  %v1309_v26 = vld [vmem:[#allocation5 + $0x150] sm:$0xf]  ;;  %v1647_v27 = vld [vmem:[#allocation5 + $0x154] sm:$0xf0]  ;;  %v1182_v29 = vor.u32 %v1615_v24, %v1181_v23 }
  0x1d   :  { %v1254_v25 = vor.u32 %v1633_v22, %v1253_v20  ;;  %v1373_v28 = vld [vmem:[#allocation5 + $0x1d0] sm:$0xf]  ;;  %725 = vmatpush.bf16.msra.mxu0 %v1190_v16  ;;  %v1663_v30 = vld [vmem:[#allocation5 + $0x1d4] sm:$0xf0]  ;;  %v1310_v33 = vor.u32 %v1647_v27, %v1309_v26  ;;  %v1173_v35 = vld [vmem:[#allocation5 + $0x40] sm:$0xf] }
  0x1e   :  { %v1245_v31 = vld [vmem:[#allocation5 + $0xd0] sm:$0xf]  ;;  %v1631_v32 = vld [vmem:[#allocation5 + $0xd4] sm:$0xf0]  ;;  %753 = vmatpush.bf16.msra.mxu2 %v1318_v17  ;;  %v1374_v34 = vor.u32 %v1663_v30, %v1373_v28  ;;  %v1613_v36 = vld [vmem:[#allocation5 + $0x44] sm:$0xf0] }
  0x1f   :  { %767 = vmatpush.bf16.msra.mxu3 %v1382_v21  ;;  %v1301_v37 = vld [vmem:[#allocation5 + $0x140] sm:$0xf]  ;;  %v1246_v38 = vor.u32 %v1631_v32, %v1245_v31  ;;  %v1645_v39 = vld [vmem:[#allocation5 + $0x144] sm:$0xf0]  ;;  %v1174_v44 = vor.u32 %v1613_v36, %v1173_v35  ;;  %v1165_v47 = vld [vmem:[#allocation5 + $0x30] sm:$0xf] }
  0x20   :  { %739 = vmatpush.bf16.msra.mxu1 %v1254_v25  ;;  %v1365_v40 = vld [vmem:[#allocation5 + $0x1c0] sm:$0xf]  ;;  %v1661_v41 = vld [vmem:[#allocation5 + $0x1c4] sm:$0xf0]  ;;  %v1302_v45 = vor.u32 %v1645_v39, %v1301_v37  ;;  %v1611_v48 = vld [vmem:[#allocation5 + $0x34] sm:$0xf0] }
  0x21   :  { %v1237_v42 = vld [vmem:[#allocation5 + $0xc0] sm:$0xf]  ;;  %v1629_v43 = vld [vmem:[#allocation5 + $0xc4] sm:$0xf0]  ;;  %726 = vmatpush.bf16.msra.mxu0 %v1182_v29  ;;  %v1366_v46 = vor.u32 %v1661_v41, %v1365_v40  ;;  %v1293_v49 = vld [vmem:[#allocation5 + $0x130] sm:$0xf]  ;;  %v1166_v56 = vor.u32 %v1611_v48, %v1165_v47 }
  0x22   :  { %754 = vmatpush.bf16.msra.mxu2 %v1310_v33  ;;  %v1238_v50 = vor.u32 %v1629_v43, %v1237_v42  ;;  %v1643_v51 = vld [vmem:[#allocation5 + $0x134] sm:$0xf0]  ;;  %v1357_v52 = vld [vmem:[#allocation5 + $0x1b0] sm:$0xf]  ;;  %v1157_v59 = vld [vmem:[#allocation5 + $0x20] sm:$0xf] }
  0x23   :  { %768 = vmatpush.bf16.msra.mxu3 %v1374_v34  ;;  %v1659_v53 = vld [vmem:[#allocation5 + $0x1b4] sm:$0xf0]  ;;  %v1229_v54 = vld [vmem:[#allocation5 + $0xb0] sm:$0xf]  ;;  %v1294_v57 = vor.u32 %v1643_v51, %v1293_v49  ;;  %v1609_v60 = vld [vmem:[#allocation5 + $0x24] sm:$0xf0] }
  0x24   :  { %740 = vmatpush.bf16.msra.mxu1 %v1246_v38  ;;  %v1627_v55 = vld [vmem:[#allocation5 + $0xb4] sm:$0xf0]  ;;  %v1358_v58 = vor.u32 %v1659_v53, %v1357_v52  ;;  %v1285_v61 = vld [vmem:[#allocation5 + $0x120] sm:$0xf]  ;;  %v1641_v63 = vld [vmem:[#allocation5 + $0x124] sm:$0xf0]  ;;  %v1158_v4 = vor.u32 %v1609_v60, %v1157_v59 }
  0x25   :  { %727 = vmatpush.bf16.msra.mxu0 %v1174_v44  ;;  %v1230_v62 = vor.u32 %v1627_v55, %v1229_v54  ;;  %v1349_v0 = vld [vmem:[#allocation5 + $0x1a0] sm:$0xf]  ;;  %v1657_v1 = vld [vmem:[#allocation5 + $0x1a4] sm:$0xf0]  ;;  %v1149_v5 = vld [vmem:[#allocation5 + $0x10] sm:$0xf]  ;;  %v1286_v6 = vor.u32 %v1641_v63, %v1285_v61 }
  0x26   :  { %755 = vmatpush.bf16.msra.mxu2 %v1302_v45  ;;  %v1221_v2 = vld [vmem:[#allocation5 + $0xa0] sm:$0xf]  ;;  %v1625_v3 = vld [vmem:[#allocation5 + $0xa4] sm:$0xf0]  ;;  %v1350_v7 = vor.u32 %v1657_v1, %v1349_v0  ;;  %v1607_v8 = vld [vmem:[#allocation5 + $0x14] sm:$0xf0] }
  0x27   :  { %769 = vmatpush.bf16.msra.mxu3 %v1366_v46  ;;  %v1277_v9 = vld [vmem:[#allocation5 + $0x110] sm:$0xf]  ;;  %v1639_v10 = vld [vmem:[#allocation5 + $0x114] sm:$0xf0]  ;;  %v1222_v11 = vor.u32 %v1625_v3, %v1221_v2  ;;  %v1141_v16 = vld [vmem:[#allocation5] sm:$0xf]  ;;  %v1150_v18 = vor.u32 %v1607_v8, %v1149_v5 }
  0x28   :  { %741 = vmatpush.bf16.msra.mxu1 %v1238_v50  ;;  %v1341_v12 = vld [vmem:[#allocation5 + $0x190] sm:$0xf]  ;;  %v1655_v13 = vld [vmem:[#allocation5 + $0x194] sm:$0xf0]  ;;  %v1605_v17 = vld [vmem:[#allocation5 + $0x4] sm:$0xf0]  ;;  %v1278_v23 = vor.u32 %v1639_v10, %v1277_v9 }
  0x29   :  { %728 = vmatpush.bf16.msra.mxu0 %v1166_v56  ;;  %v1213_v14 = vld [vmem:[#allocation5 + $0x90] sm:$0xf]  ;;  %v1623_v15 = vld [vmem:[#allocation5 + $0x94] sm:$0xf0]  ;;  %v1269_v19 = vld [vmem:[#allocation5 + $0x100] sm:$0xf]  ;;  %v1342_v24 = vor.u32 %v1655_v13, %v1341_v12  ;;  %v1142_v35 = vor.u32 %v1605_v17, %v1141_v16 }
  0x2a   :  { %756 = vmatpush.bf16.msra.mxu2 %v1294_v57  ;;  %v1637_v20 = vld [vmem:[#allocation5 + $0x104] sm:$0xf0]  ;;  %v1333_v21 = vld [vmem:[#allocation5 + $0x180] sm:$0xf]  ;;  %v1453_v25 = vld [vmem:[#allocation5 + $0x270] sm:$0xf]  ;;  %v1214_v28 = vor.u32 %v1623_v15, %v1213_v14 }
  0x2b   :  { %770 = vmatpush.bf16.msra.mxu3 %v1358_v58  ;;  %v1653_v22 = vld [vmem:[#allocation5 + $0x184] sm:$0xf0]  ;;  %v1683_v26 = vld [vmem:[#allocation5 + $0x274] sm:$0xf0]  ;;  %v1618_v27 = vld [vmem:[#allocation5 + $0x74] sm:$0xf]  ;;  %v1270_v39 = vor.u32 %v1637_v20, %v1269_v19 }
  0x2c   :  { %742 = vmatpush.bf16.msra.mxu1 %v1230_v62  ;;  %v1199_v29 = vld [vmem:[#allocation5 + $0x78] sm:$0xf0]  ;;  %v1205_v30 = vld [vmem:[#allocation5 + $0x80] sm:$0xf]  ;;  %v1621_v31 = vld [vmem:[#allocation5 + $0x84] sm:$0xf0]  ;;  %v1334_v40 = vor.u32 %v1653_v22, %v1333_v21  ;;  %v1454_v44 = vor.u32 %v1683_v26, %v1453_v25 }
  0x2d   :  { %729 = vmatpush.bf16.msra.mxu0 %v1158_v4  ;;  %v1121_v32 = vld [vmem:[#allocation2 + $0x8] sm:$0xf]  ;;  %v1601_v33 = vld [vmem:[#allocation2 + $0x20] sm:$0xf0]  ;;  %v1699_v36 = vld [vmem:[#allocation5 + $0x2f4] sm:$0xf0]  ;;  %v1202_v45 = vor.u32 %v1618_v27, %v1199_v29  ;;  %v1206_v49 = vor.u32 %v1621_v31, %v1205_v30 }
  0x2e   :  { %757 = vmatpush.bf16.msra.mxu2 %v1286_v6  ;;  %v1517_v34 = vld [vmem:[#allocation5 + $0x2f0] sm:$0xf]  ;;  %v1525_v37 = vld [vmem:[#allocation5 + $0x300] sm:$0xf]  ;;  %v1701_v38 = vld [vmem:[#allocation5 + $0x304] sm:$0xf0]  ;;  %v1919_v54 = vor.u32 %v1601_v33, %v1121_v32 }
  0x2f   :  { %771 = vmatpush.bf16.msra.mxu3 %v1350_v7  ;;  %v1634_v41 = vld [vmem:[#allocation5 + $0xf4] sm:$0xf]  ;;  %v1263_v42 = vld [vmem:[#allocation5 + $0xf8] sm:$0xf0]  ;;  %v1113_v43 = vld [vmem:[#allocation2] sm:$0xf]  ;;  %v1526_v50 = vor.u32 %v1701_v38, %v1525_v37  ;;  %v1518_v55 = vor.u32 %v1699_v36, %v1517_v34 }
  0x30   :  { %743 = vmatpush.bf16.msra.mxu1 %v1222_v11  ;;  %v1600_v46 = vld [vmem:[#allocation2 + $0x18] sm:$0xf0]  ;;  %v1598_v47 = vld [vmem:[#allocation2 + $0xc] sm:$0xf]  ;;  %v1123_v48 = vld [vmem:[#allocation2 + $0x24] sm:$0xf0]  ;;  %v1266_v59 = vor.u32 %v1634_v41, %v1263_v42 }
  0x31   :  { %730 = vmatpush.bf16.msra.mxu0 %v1150_v18  ;;  %v1445_v51 = vld [vmem:[#allocation5 + $0x260] sm:$0xf]  ;;  %v1681_v52 = vld [vmem:[#allocation5 + $0x264] sm:$0xf0]  ;;  %v1616_v53 = vld [vmem:[#allocation5 + $0x64] sm:$0xf]  ;;  %v1921_v60 = vor.u32 %v1600_v46, %v1113_v43  ;;  %v1923_v63 = vor.u32 %v1598_v47, %v1123_v48 }
  0x32   :  { %758 = vmatpush.bf16.msra.mxu2 %v1278_v23  ;;  %v1191_v56 = vld [vmem:[#allocation5 + $0x68] sm:$0xf0]  ;;  %v1115_v58 = vld [vmem:[#allocation2 + $0x1c] sm:$0xf0]  ;;  %v1509_v61 = vld [vmem:[#allocation5 + $0x2e0] sm:$0xf]  ;;  %v1446_v0 = vor.u32 %v1681_v52, %v1445_v51 }
  0x33   :  { %772 = vmatpush.bf16.msra.mxu3 %v1342_v24  ;;  %v1597_v57 = vld [vmem:[#allocation2 + $0x4] sm:$0xf]  ;;  %v1697_v62 = vld [vmem:[#allocation5 + $0x2e4] sm:$0xf0]  ;;  %v1632_v1 = vld [vmem:[#allocation5 + $0xe4] sm:$0xf]  ;;  %v1194_v3 = vor.u32 %v1616_v53, %v1191_v56 }
  0x34   :  { %744 = vmatpush.bf16.msra.mxu1 %v1214_v28  ;;  %v1255_v2 = vld [vmem:[#allocation5 + $0xe8] sm:$0xf0]  ;;  %v1925_v4 = vor.u32 %v1597_v57, %v1115_v58  ;;  %v1437_v5 = vld [vmem:[#allocation5 + $0x250] sm:$0xf]  ;;  %v1679_v6 = vld [vmem:[#allocation5 + $0x254] sm:$0xf0]  ;;  %v1510_v7 = vor.u32 %v1697_v62, %v1509_v61 }
  0x35   :  { %731 = vmatpush.bf16.msra.mxu0 %v1142_v35  ;;  %v1614_v8 = vld [vmem:[#allocation5 + $0x54] sm:$0xf]  ;;  %v1183_v9 = vld [vmem:[#allocation5 + $0x58] sm:$0xf0]  ;;  %v1258_v10 = vor.u32 %v1632_v1, %v1255_v2  ;;  %v1501_v11 = vld [vmem:[#allocation5 + $0x2d0] sm:$0xf]  ;;  %v1438_v13 = vor.u32 %v1679_v6, %v1437_v5 }
  0x36   :  { %759 = vmatpush.bf16.msra.mxu2 %v1270_v39  ;;  %v1695_v12 = vld [vmem:[#allocation5 + $0x2d4] sm:$0xf0]  ;;  %v1630_v14 = vld [vmem:[#allocation5 + $0xd4] sm:$0xf]  ;;  %v1247_v15 = vld [vmem:[#allocation5 + $0xd8] sm:$0xf0]  ;;  %v1186_v16 = vor.u32 %v1614_v8, %v1183_v9 }
  0x37   :  { %773 = vmatpush.bf16.msra.mxu3 %v1334_v40  ;;  %v1429_v17 = vld [vmem:[#allocation5 + $0x240] sm:$0xf]  ;;  %v1677_v18 = vld [vmem:[#allocation5 + $0x244] sm:$0xf0]  ;;  %v1502_v19 = vor.u32 %v1695_v12, %v1501_v11  ;;  %v1612_v20 = vld [vmem:[#allocation5 + $0x44] sm:$0xf]  ;;  %v1250_v22 = vor.u32 %v1630_v14, %v1247_v15 }
  0x38   :  { %745 = vmatpush.bf16.msra.mxu1 %v1206_v49  ;;  %732 = vmatmul.bf16.vlgmr.msra.gmra.mxu0 %v1921_v60  ;;  %v1175_v21 = vld [vmem:[#allocation5 + $0x48] sm:$0xf0]  ;;  %v1493_v23 = vld [vmem:[#allocation5 + $0x2c0] sm:$0xf]  ;;  %v1693_v24 = vld [vmem:[#allocation5 + $0x2c4] sm:$0xf0]  ;;  %v1430_v25 = vor.u32 %v1677_v18, %v1429_v17 }
  0x39   :  { %780 = vmatpush.bf16.msrb.mxu0 %v1454_v44  ;;  %760 = vmatmul.bf16.vlgmr.msra.gmra.mxu2 %v1919_v54  ;;  %v1628_v26 = vld [vmem:[#allocation5 + $0xc4] sm:$0xf]  ;;  %v1239_v27 = vld [vmem:[#allocation5 + $0xc8] sm:$0xf0]  ;;  %v1178_v28 = vor.u32 %v1612_v20, %v1175_v21  ;;  %v1421_v29 = vld [vmem:[#allocation5 + $0x230] sm:$0xf]  ;;  %v1494_v31 = vor.u32 %v1693_v24, %v1493_v23 }
  0x3a   :  { %815 = vmatpush.bf16.msrb.mxu2 %v1526_v50  ;;  %774 = vmatmul.bf16.vlgmr.msra.gmra.mxu3 %v1923_v63  ;;  %v1675_v30 = vld [vmem:[#allocation5 + $0x234] sm:$0xf0]  ;;  %v1610_v32 = vld [vmem:[#allocation5 + $0x34] sm:$0xf]  ;;  %v1167_v33 = vld [vmem:[#allocation5 + $0x38] sm:$0xf0]  ;;  %v1242_v35 = vor.u32 %v1628_v26, %v1239_v27 }
  0x3b   :  { %822 = vmatpush.bf16.msrb.mxu3 %v1202_v45  ;;  %746 = vmatmul.bf16.vlgmr.msra.gmra.mxu1 %v1925_v4  ;;  %v1485_v34 = vld [vmem:[#allocation5 + $0x2b0] sm:$0xf]  ;;  %v1691_v36 = vld [vmem:[#allocation5 + $0x2b4] sm:$0xf0]  ;;  %v1137_v37 = vld [vmem:[#allocation2 + $0x18] sm:$0xf]  ;;  %v1422_v39 = vor.u32 %v1675_v30, %v1421_v29  ;;  %v1170_v42 = vor.u32 %v1610_v32, %v1167_v33 }
  0x3c   :  { %794 = vmatpush.bf16.msrb.mxu1 %v1518_v55  ;;  %v1603_v38 = vld [vmem:[#allocation2 + $0x30] sm:$0xf0]  ;;  %v1626_v40 = vld [vmem:[#allocation5 + $0xb4] sm:$0xf]  ;;  %v1413_v43 = vld [vmem:[#allocation5 + $0x220] sm:$0xf]  ;;  %v1486_v45 = vor.u32 %v1691_v36, %v1485_v34 }
  0x3d   :  { %781 = vmatpush.bf16.msrb.mxu0 %v1446_v0  ;;  %v1231_v41 = vld [vmem:[#allocation5 + $0xb8] sm:$0xf0]  ;;  %v1673_v44 = vld [vmem:[#allocation5 + $0x224] sm:$0xf0]  ;;  %v1608_v46 = vld [vmem:[#allocation5 + $0x24] sm:$0xf]  ;;  %v1931_v48 = vor.u32 %v1603_v38, %v1137_v37 }
  0x3e   :  { %836 = vmatpush.bf16.msra.mxu2 %v1266_v59  ;;  %v1159_v47 = vld [vmem:[#allocation5 + $0x28] sm:$0xf0]  ;;  %v1234_v49 = vor.u32 %v1626_v40, %v1231_v41  ;;  %v1477_v50 = vld [vmem:[#allocation5 + $0x2a0] sm:$0xf]  ;;  %v1689_v51 = vld [vmem:[#allocation5 + $0x2a4] sm:$0xf0]  ;;  %v1414_v52 = vor.u32 %v1673_v44, %v1413_v43 }
  0x3f   :  { %823 = vmatpush.bf16.msrb.mxu3 %v1194_v3  ;;  %vm720_vm0 = vcmask 130048   ;;  %v1624_v53 = vld [vmem:[#allocation5 + $0xa4] sm:$0xf]  ;;  %v1223_v55 = vld [vmem:[#allocation5 + $0xa8] sm:$0xf0]  ;;  %v1162_v56 = vor.u32 %v1608_v46, %v1159_v47  ;;  %v1478_v61 = vor.u32 %v1689_v51, %v1477_v50 }
  0x40   :  { %795 = vmatpush.bf16.msrb.mxu1 %v1510_v7  ;;  %v1405_v57 = vld [vmem:[#allocation5 + $0x210] sm:$0xf]  ;;  %v1671_v58 = vld [vmem:[#allocation5 + $0x214] sm:$0xf0]  ;;  %v1606_v59 = vld [vmem:[#allocation5 + $0x14] sm:$0xf]  ;;  %v1226_v2 = vor.u32 %v1624_v53, %v1223_v55 }
  0x41   :  { %782 = vmatpush.bf16.msrb.mxu0 %v1438_v13  ;;  %v1151_v62 = vld [vmem:[#allocation5 + $0x18] sm:$0xf0]  ;;  %v1469_v0 = vld [vmem:[#allocation5 + $0x290] sm:$0xf]  ;;  %v1687_v1 = vld [vmem:[#allocation5 + $0x294] sm:$0xf0]  ;;  %v1406_v7 = vor.u32 %v1671_v58, %v1405_v57 }
  0x42   :  { %837 = vmatpush.bf16.msra.mxu2 %v1258_v10  ;;  %v1622_v3 = vld [vmem:[#allocation5 + $0x94] sm:$0xf]  ;;  %v1215_v5 = vld [vmem:[#allocation5 + $0x98] sm:$0xf0]  ;;  %v1397_v6 = vld [vmem:[#allocation5 + $0x200] sm:$0xf]  ;;  %v1154_v11 = vor.u32 %v1606_v59, %v1151_v62  ;;  %v1470_v15 = vor.u32 %v1687_v1, %v1469_v0 }
  0x43   :  { %824 = vmatpush.bf16.msrb.mxu3 %v1186_v16  ;;  %v1669_v8 = vld [vmem:[#allocation5 + $0x204] sm:$0xf0]  ;;  %v1604_v9 = vld [vmem:[#allocation5 + $0x4] sm:$0xf]  ;;  %v1143_v10 = vld [vmem:[#allocation5 + $0x8] sm:$0xf0] }
  0x44   :  { %796 = vmatpush.bf16.msrb.mxu1 %v1502_v19  ;;  %v1650_v12 = vld [vmem:[#allocation5 + $0x174] sm:$0xf]  ;;  %v1327_v13 = vld [vmem:[#allocation5 + $0x178] sm:$0xf0]  ;;  %v1461_v17 = vld [vmem:[#allocation5 + $0x280] sm:$0xf]  ;;  %v1218_v19 = vor.u32 %v1622_v3, %v1215_v5  ;;  %v1398_v23 = vor.u32 %v1669_v8, %v1397_v6  ;;  %v1146_v27 = vor.u32 %v1604_v9, %v1143_v10 }
  0x45   :  { %783 = vmatpush.bf16.msrb.mxu0 %v1430_v25  ;;  %v1682_v14 = vld [vmem:[#allocation5 + $0x274] sm:$0xf]  ;;  %v1455_v16 = vld [vmem:[#allocation5 + $0x278] sm:$0xf0]  ;;  %v1685_v18 = vld [vmem:[#allocation5 + $0x284] sm:$0xf0] }
  0x46   :  { %838 = vmatpush.bf16.msra.mxu2 %v1250_v22  ;;  %v1129_v20 = vld [vmem:[#allocation2 + $0x10] sm:$0xf]  ;;  %v1602_v21 = vld [vmem:[#allocation2 + $0x28] sm:$0xf0]  ;;  %v1620_v22 = vld [vmem:[#allocation5 + $0x84] sm:$0xf]  ;;  %v1458_v32 = vor.u32 %v1682_v14, %v1455_v16  ;;  %v1462_v33 = vor.u32 %v1685_v18, %v1461_v17 }
  0x47   :  { %825 = vmatpush.bf16.msrb.mxu3 %v1178_v28  ;;  %v1207_v24 = vld [vmem:[#allocation5 + $0x88] sm:$0xf0]  ;;  %v1666_v25 = vld [vmem:[#allocation5 + $0x1f4] sm:$0xf]  ;;  %v1391_v26 = vld [vmem:[#allocation5 + $0x1f8] sm:$0xf0]  ;;  %v1330_v28 = vor.u32 %v1650_v12, %v1327_v13  ;;  %v1935_v37 = vor.u32 %v1602_v21, %v1129_v20 }
  0x48   :  { %797 = vmatpush.bf16.msrb.mxu1 %v1494_v31  ;;  %v1698_v29 = vld [vmem:[#allocation5 + $0x2f4] sm:$0xf]  ;;  %v1519_v30 = vld [vmem:[#allocation5 + $0x2f8] sm:$0xf0]  ;;  %v1131_v34 = vld [vmem:[#allocation2 + $0x2c] sm:$0xf0]  ;;  %v1210_v38 = vor.u32 %v1620_v22, %v1207_v24  ;;  %v1394_v41 = vor.u32 %v1666_v25, %v1391_v26 }
  0x49   :  { %784 = vmatpush.bf16.msrb.mxu0 %v1422_v39  ;;  %1531 = vmatmul.msk.bf16.vlgmr.msrb.gmra.mxu2 %vm720_vm0, %v1931_v48  ;;  %v1599_v31 = vld [vmem:[#allocation2 + $0x14] sm:$0xf]  ;;  %v1319_v36 = vld [vmem:[#allocation5 + $0x168] sm:$0xf0]  ;;  %v1680_v39 = vld [vmem:[#allocation5 + $0x264] sm:$0xf] }
  0x4a   :  { %839 = vmatpush.bf16.msra.mxu2 %v1242_v35  ;;  %v1648_v35 = vld [vmem:[#allocation5 + $0x164] sm:$0xf]  ;;  %v1447_v40 = vld [vmem:[#allocation5 + $0x268] sm:$0xf0]  ;;  %v1937_v44 = vor.u32 %v1599_v31, %v1131_v34  ;;  %v1646_v51 = vld [vmem:[#allocation5 + $0x154] sm:$0xf] }
  0x4b   :  { %826 = vmatpush.bf16.msrb.mxu3 %v1170_v42  ;;  %v1522_v42 = vor.u32 %v1698_v29, %v1519_v30  ;;  %v1664_v43 = vld [vmem:[#allocation5 + $0x1e4] sm:$0xf]  ;;  %v1383_v46 = vld [vmem:[#allocation5 + $0x1e8] sm:$0xf0]  ;;  %v1450_v50 = vor.u32 %v1680_v39, %v1447_v40  ;;  %v1678_v53 = vld [vmem:[#allocation5 + $0x254] sm:$0xf] }
  0x4c   :  { %798 = vmatpush.bf16.msrb.mxu1 %v1486_v45  ;;  %v1322_v45 = vor.u32 %v1648_v35, %v1319_v36  ;;  %v1696_v47 = vld [vmem:[#allocation5 + $0x2e4] sm:$0xf]  ;;  %v1439_v55 = vld [vmem:[#allocation5 + $0x258] sm:$0xf0]  ;;  %v1662_v58 = vld [vmem:[#allocation5 + $0x1d4] sm:$0xf] }
  0x4d   :  { %785 = vmatpush.bf16.msrb.mxu0 %v1414_v52  ;;  %v1311_v52 = vld [vmem:[#allocation5 + $0x158] sm:$0xf0]  ;;  %v1694_v62 = vld [vmem:[#allocation5 + $0x2d4] sm:$0xf]  ;;  %v1442_v1 = vor.u32 %v1678_v53, %v1439_v55  ;;  %v1303_v3 = vld [vmem:[#allocation5 + $0x148] sm:$0xf0] }
  0x4e   :  { %840 = vmatpush.bf16.msra.mxu2 %v1234_v49  ;;  %v1511_v49 = vld [vmem:[#allocation5 + $0x2e8] sm:$0xf0]  ;;  %v1314_v59 = vor.u32 %v1646_v51, %v1311_v52  ;;  %v1503_v0 = vld [vmem:[#allocation5 + $0x2d8] sm:$0xf0]  ;;  %v1676_v5 = vld [vmem:[#allocation5 + $0x244] sm:$0xf] }
  0x4f   :  { %827 = vmatpush.bf16.msrb.mxu3 %v1162_v56  ;;  %v1386_v56 = vor.u32 %v1664_v43, %v1383_v46  ;;  %v1514_v57 = vor.u32 %v1696_v47, %v1511_v49  ;;  %v1431_v6 = vld [vmem:[#allocation5 + $0x248] sm:$0xf0]  ;;  %v1506_v8 = vor.u32 %v1694_v62, %v1503_v0  ;;  %v1660_v9 = vld [vmem:[#allocation5 + $0x1c4] sm:$0xf]  ;;  %v1295_v16 = vld [vmem:[#allocation5 + $0x138] sm:$0xf0] }
  0x50   :  { %799 = vmatpush.bf16.msrb.mxu1 %v1478_v61  ;;  %v1375_v61 = vld [vmem:[#allocation5 + $0x1d8] sm:$0xf0]  ;;  %v1367_v10 = vld [vmem:[#allocation5 + $0x1c8] sm:$0xf0]  ;;  %v1692_v12 = vld [vmem:[#allocation5 + $0x2c4] sm:$0xf]  ;;  %v1434_v14 = vor.u32 %v1676_v5, %v1431_v6 }
  0x51   :  { %786 = vmatpush.bf16.msrb.mxu0 %v1406_v7  ;;  %v1378_v7 = vor.u32 %v1662_v58, %v1375_v61  ;;  %v1495_v13 = vld [vmem:[#allocation5 + $0x2c8] sm:$0xf0]  ;;  %v1674_v17 = vld [vmem:[#allocation5 + $0x234] sm:$0xf]  ;;  %v1370_v18 = vor.u32 %v1660_v9, %v1367_v10  ;;  %v1359_v21 = vld [vmem:[#allocation5 + $0x1b8] sm:$0xf0] }
  0x52   :  { %841 = vmatpush.bf16.msra.mxu2 %v1226_v2  ;;  %v1644_v2 = vld [vmem:[#allocation5 + $0x144] sm:$0xf]  ;;  %v1690_v22 = vld [vmem:[#allocation5 + $0x2b4] sm:$0xf]  ;;  %v1287_v26 = vld [vmem:[#allocation5 + $0x128] sm:$0xf0] }
  0x53   :  { %828 = vmatpush.bf16.msrb.mxu3 %v1154_v11  ;;  %v1306_v11 = vor.u32 %v1644_v2, %v1303_v3  ;;  %v1640_v25 = vld [vmem:[#allocation5 + $0x124] sm:$0xf]  ;;  %v1479_v35 = vld [vmem:[#allocation5 + $0x2a8] sm:$0xf0]  ;;  %v1279_v39 = vld [vmem:[#allocation5 + $0x118] sm:$0xf0] }
  0x54   :  { %800 = vmatpush.bf16.msrb.mxu1 %v1470_v15  ;;  %v1642_v15 = vld [vmem:[#allocation5 + $0x134] sm:$0xf]  ;;  %v1656_v31 = vld [vmem:[#allocation5 + $0x1a4] sm:$0xf]  ;;  %v1343_v47 = vld [vmem:[#allocation5 + $0x198] sm:$0xf0] }
  0x55   :  { %787 = vmatpush.bf16.msrb.mxu0 %v1398_v23  ;;  %v1298_v20 = vor.u32 %v1642_v15, %v1295_v16  ;;  %v1487_v23 = vld [vmem:[#allocation5 + $0x2b8] sm:$0xf0]  ;;  %v1688_v34 = vld [vmem:[#allocation5 + $0x2a4] sm:$0xf]  ;;  %v1670_v40 = vld [vmem:[#allocation5 + $0x214] sm:$0xf] }
  0x56   :  { %842 = vmatpush.bf16.msra.mxu2 %v1218_v19  ;;  %v1658_v19 = vld [vmem:[#allocation5 + $0x1b4] sm:$0xf]  ;;  %v1490_v30 = vor.u32 %v1690_v22, %v1487_v23  ;;  %v1482_v43 = vor.u32 %v1688_v34, %v1479_v35  ;;  %v1636_v52 = vld [vmem:[#allocation5 + $0x104] sm:$0xf]  ;;  %v1271_v53 = vld [vmem:[#allocation5 + $0x108] sm:$0xf0] }
  0x57   :  { %829 = vmatpush.bf16.msrb.mxu3 %v1146_v27  ;;  %v1672_v27 = vld [vmem:[#allocation5 + $0x224] sm:$0xf]  ;;  %v1362_v29 = vor.u32 %v1658_v19, %v1359_v21  ;;  %v1686_v49 = vld [vmem:[#allocation5 + $0x294] sm:$0xf]  ;;  %v1527_v58 = vld [vmem:[#allocation5 + $0x308] sm:$0xf0]  ;;  %v1274_v62 = vor.u32 %v1636_v52, %v1271_v53 }
  0x58   :  { %801 = vmatpush.bf16.msrb.mxu1 %v1462_v33  ;;  %788 = vmatmul.bf16.vlgmr.msrb.gmra.mxu0 %v1935_v37  ;;  %v1351_v33 = vld [vmem:[#allocation5 + $0x1a8] sm:$0xf0]  ;;  %v1668_v55 = vld [vmem:[#allocation5 + $0x204] sm:$0xf]  ;;  %v1702_v15 = vld [vmem:[#allocation8] sm:$0xff] }
  0x59   :  { %850 = vmatpush.bf16.msra.mxu0 %v1330_v28  ;;  %v1415_v28 = vld [vmem:[#allocation5 + $0x228] sm:$0xf0]  ;;  %v1652_v0 = vld [vmem:[#allocation5 + $0x184] sm:$0xf]  ;;  %v1711_v53 = vld [vmem:[#allocation8 + $0x48] sm:$0xff] }
  0x5a   :  { %843 = vmatpush.bf16.msra.mxu2 %v1210_v38  ;;  %830 = vmatmul.bf16.vlgmr.msrb.gmra.mxu3 %v1921_v60  ;;  %v1498_v60 = vor.u32 %v1692_v12, %v1495_v13  ;;  %v1418_v36 = vor.u32 %v1672_v27, %v1415_v28  ;;  %v1638_v38 = vld [vmem:[#allocation5 + $0x114] sm:$0xf]  ;;  %v1684_v3 = vld [vmem:[#allocation5 + $0x284] sm:$0xf]  ;;  %v1463_v5 = vld [vmem:[#allocation5 + $0x288] sm:$0xf0] }
  0x5b   :  { %878 = vmatpush.bf16.msra.mxu3 %v1458_v32  ;;  %802 = vmatmul.bf16.vlgmr.msrb.gmra.mxu1 %v1937_v44  ;;  %v1290_v32 = vor.u32 %v1640_v25, %v1287_v26  ;;  %v1282_v46 = vor.u32 %v1638_v38, %v1279_v39  ;;  %v1709_v9 = vld [vmem:[#allocation8 + $0x38] sm:$0xff]  ;;  %v1708_v10 = vld [vmem:[#allocation8 + $0x30] sm:$0xff]  ;;  %v1706_v12 = vld [vmem:[#allocation8 + $0x20] sm:$0xff] }
  0x5c   :  { %864 = vmatpush.bf16.msra.mxu1 %v1394_v41  ;;  %v1407_v41 = vld [vmem:[#allocation5 + $0x218] sm:$0xf0]  ;;  %v1705_v13 = vld [vmem:[#allocation8 + $0x18] sm:$0xff]  ;;  %v1716_v27 = vld [vmem:[#allocation8 + $0x70] sm:$0xff] }
  0x5d   :  { %851 = vmatpush.bf16.msra.mxu0 %v1322_v45  ;;  %844 = vmatmul.bf16.vlgmr.msra.gmra.mxu2 %v1925_v4  ;;  %v1423_v4 = vld [vmem:[#allocation5 + $0x238] sm:$0xf0]  ;;  %v1654_v45 = vld [vmem:[#allocation5 + $0x194] sm:$0xf]  ;;  %v1410_v51 = vor.u32 %v1670_v40, %v1407_v41  ;;  %v1717_v22 = vld [vmem:[#allocation8 + $0x78] sm:$0xff] }
  0x5e   :  { %892 = vmatpush.bf16.msrb.mxu2 %v1522_v42  ;;  %v1426_v24 = vor.u32 %v1674_v17, %v1423_v4  ;;  %v1354_v42 = vor.u32 %v1656_v31, %v1351_v33  ;;  %v1715_v33 = vld [vmem:[#allocation8 + $0x68] sm:$0xff]  ;;  %v1714_v38 = vld [vmem:[#allocation8 + $0x60] sm:$0xff] }
  0x5f   :  { %879 = vmatpush.bf16.msra.mxu3 %v1450_v50  ;;  %v1471_v50 = vld [vmem:[#allocation5 + $0x298] sm:$0xf0] }
  0x60   :  { %865 = vmatpush.bf16.msra.mxu1 %v1386_v56  ;;  %v1399_v56 = vld [vmem:[#allocation5 + $0x208] sm:$0xf0]  ;;  %v1474_v61 = vor.u32 %v1686_v49, %v1471_v50  ;;  %v1712_v50 = vld [vmem:[#allocation8 + $0x50] sm:$0xff] }
  0x61   :  { %852 = vmatpush.bf16.msra.mxu0 %v1314_v59  ;;  %v1346_v59 = vor.u32 %v1654_v45, %v1343_v47  ;;  %v1402_v2 = vor.u32 %v1668_v55, %v1399_v56  ;;  %v1713_v45 = vld [vmem:[#allocation8 + $0x58] sm:$0xff]  ;;  %v1710_v56 = vld [vmem:[#allocation8 + $0x40] sm:$0xff] }
  0x62   :  { %893 = vmatpush.bf16.msrb.mxu2 %v1514_v57  ;;  %v1700_v57 = vld [vmem:[#allocation5 + $0x304] sm:$0xf] }
  0x63   :  { %880 = vmatpush.bf16.msra.mxu3 %v1442_v1  ;;  %v1335_v1 = vld [vmem:[#allocation5 + $0x188] sm:$0xf0]  ;;  %v1530_v6 = vor.u32 %v1700_v57, %v1527_v58 }
  0x64   :  { %866 = vmatpush.bf16.msra.mxu1 %v1378_v7  ;;  %v1338_v7 = vor.u32 %v1652_v0, %v1335_v1 }
  0x65   :  { %853 = vmatpush.bf16.msra.mxu0 %v1306_v11  ;;  %v1707_v11 = vld [vmem:[#allocation8 + $0x28] sm:$0xff] }
  0x66   :  { %894 = vmatpush.bf16.msrb.mxu2 %v1506_v8  ;;  %v1466_v8 = vor.u32 %v1684_v3, %v1463_v5 }
  0x67   :  { %881 = vmatpush.bf16.msra.mxu3 %v1434_v14 }
  0x68   :  { %867 = vmatpush.bf16.msra.mxu1 %v1370_v18 }
  0x69   :  { %854 = vmatpush.bf16.msra.mxu0 %v1298_v20 }
  0x6a   :  { %895 = vmatpush.bf16.msrb.mxu2 %v1498_v60 }
  0x6b   :  { %882 = vmatpush.bf16.msra.mxu3 %v1426_v24 }
  0x6c   :  { %868 = vmatpush.bf16.msra.mxu1 %v1362_v29 }
  0x6d   :  { %855 = vmatpush.bf16.msra.mxu0 %v1290_v32 }
  0x6e   :  { %896 = vmatpush.bf16.msrb.mxu2 %v1490_v30 }
  0x6f   :  { %883 = vmatpush.bf16.msra.mxu3 %v1418_v36 }
  0x70   :  { %869 = vmatpush.bf16.msra.mxu1 %v1354_v42 }
  0x71   :  { %856 = vmatpush.bf16.msra.mxu0 %v1282_v46 }
  0x72   :  { %897 = vmatpush.bf16.msrb.mxu2 %v1482_v43 }
  0x73   :  { %884 = vmatpush.bf16.msra.mxu3 %v1410_v51 }
  0x74   :  { %870 = vmatpush.bf16.msra.mxu1 %v1346_v59 }
  0x75   :  { %857 = vmatpush.bf16.msra.mxu0 %v1274_v62 }
  0x76   :  { %898 = vmatpush.bf16.msrb.mxu2 %v1474_v61 }
  0x77   :  { %885 = vmatpush.bf16.msra.mxu3 %v1402_v2 }
  0x78   :  { %871 = vmatpush.bf16.msra.mxu1 %v1338_v7  ;;  %858 = vmatmul.bf16.vlgmr.msra.gmra.mxu0 %v1919_v54  ;;  %v1704_v54 = vld [vmem:[#allocation8 + $0x10] sm:$0xff] }
  0x79   :  { %913 = vmatpush.bf16.msrb.mxu0 %v1530_v6 }
  0x7a   :  { %886 = vmatmul.bf16.vlgmr.msra.gmra.mxu3 %v1935_v37  ;;  %899 = vmatpush.bf16.msrb.mxu2 %v1466_v8  ;;  %v1703_v37 = vld [vmem:[#allocation8 + $0x8] sm:$0xff] }
  0x7b   :  { %872 = vmatmul.bf16.vlgmr.msra.gmra.mxu1 %v1923_v63  ;;  %v189_v63 = vld [vmem:[#allocation7] sm:$0x3]  ;;  %1072 = vmatpush.bf16.msrb.mxu3 %v1717_v22 }
  0x7c   :  { %1058 = vmatpush.bf16.msrb.mxu1 %v1709_v9  ;;  %v192_v57 = vperm.slane %v189_v63, 1 }
  0x7d   :  { %900 = vmatmul.bf16.vlgmr.msrb.gmra.mxu2 %v1937_v44 }
  0x7f   :  { %1073 = vmatpush.bf16.msrb.mxu3 %v1716_v27 }
  0x80   :  { %1059 = vmatpush.bf16.msrb.mxu1 %v1708_v10 }
  0x83   :  { %1074 = vmatpush.bf16.msrb.mxu3 %v1715_v33 }
  0x84   :  { %1060 = vmatpush.bf16.msrb.mxu1 %v1707_v11 }
  0x87   :  { %1075 = vmatpush.bf16.msrb.mxu3 %v1714_v38 }
  0x88   :  { %1532 = vmatmul.msk.bf16.vlgmr.msrb.gmra.mxu0 %vm720_vm0, %v1931_v48  ;;  %1061 = vmatpush.bf16.msrb.mxu1 %v1706_v12  ;;  %v191_v48 = vperm.slane %v189_v63, 0 }
  0x8b   :  { %1076 = vmatpush.bf16.msrb.mxu3 %v1713_v45 }
  0x8c   :  { %1062 = vmatpush.bf16.msrb.mxu1 %v1705_v13 }
  0x8f   :  { %1077 = vmatpush.bf16.msrb.mxu3 %v1712_v50 }
  0x90   :  { %1063 = vmatpush.bf16.msrb.mxu1 %v1704_v54 }
  0x93   :  { %1078 = vmatpush.bf16.msrb.mxu3 %v1711_v53 }
  0x94   :  { %1064 = vmatpush.bf16.msrb.mxu1 %v1703_v37 }
  0x97   :  { %1079 = vmatpush.bf16.msrb.mxu3 %v1710_v56 }
  0x98   :  { %1065 = vmatpush.bf16.msrb.mxu1 %v1702_v15 }
  0xb5   :  { %v733_v14 = vpop.f32.mrf.mxu0 }
  0xb6   :  { %v734_v17 = vadd.f32 %v733_v14, %v191_v48 }
  0xb8   :  { %v747_v16 = vpop.f32.mrf.mxu1 }
  0xb9   :  { %v748_v60 = vadd.f32 %v747_v16, %v734_v17 }
  0xbc   :  { %v761_v44 = vpop.f32.mrf.mxu2 }
  0xbd   :  { %v735_v4 = vpop.f32.mrf.mxu0  ;;  %v775_v19 = vpop.f32.mrf.mxu3  ;;  %v762_v23 = vadd.f32 %v761_v44, %v748_v60 }
  0xbe   :  { %v736_v21 = vadd.f32 %v735_v4, %v191_v48 }
  0xbf   :  { %v776_v28 = vadd.f32 %v775_v19, %v762_v23 }
  0xc0   :  { %v749_v20 = vpop.f32.mrf.mxu1 }
  0xc1   :  { %v750_v24 = vadd.f32 %v749_v20, %v736_v21  ;;  %v1734_v21 = vld [vmem:[%s1962_s4] ss:$0 sm:$0xff] }
  0xc4   :  { %v763_v18 = vpop.f32.mrf.mxu2 }
  0xc5   :  { %v764_v30 = vadd.f32 %v763_v18, %v750_v24  ;;  %v777_v32 = vpop.f32.mrf.mxu3 }
  0xc7   :  { %v778_v34 = vadd.f32 %v777_v32, %v764_v30 }
  0xcc   :  { %v817_v26 = vpop.f32.mrf.mxu2 }
  0xd4   :  { %v819_v41 = vpop.f32.mrf.mxu2 }
  0xd5   :  { %v789_v25 = vpop.f32.mrf.mxu0 }
  0xd6   :  { %v790_v31 = vadd.f32 %v789_v25, %v776_v28 }
  0xd8   :  { %v803_v29 = vpop.f32.mrf.mxu1 }
  0xd9   :  { %v804_v35 = vadd.f32 %v803_v29, %v790_v31 }
  0xdb   :  { %v818_v42 = vadd.f32 %v817_v26, %v804_v35 }
  0xdd   :  { %v791_v36 = vpop.f32.mrf.mxu0  ;;  %v920_v47 = vmax.f32 %v818_v42, 0.0  ;;  %v831_v52 = vpop.f32.mrf.mxu3 }
  0xde   :  { %v792_v39 = vadd.f32 %v791_v36, %v778_v34  ;;  %v832_v62 = vadd.f32 %v831_v52, %v192_v57 }
  0xe0   :  { %v805_v40 = vpop.f32.mrf.mxu1  ;;  %v845_v55 = vpop.f32.mrf.mxu2 }
  0xe1   :  { %v806_v43 = vadd.f32 %v805_v40, %v792_v39  ;;  %v846_v1 = vadd.f32 %v845_v55, %v832_v62 }
  0xe3   :  { %v820_v46 = vadd.f32 %v819_v41, %v806_v43 }
  0xe5   :  { %v922_v49 = vmax.f32 %v820_v46, 0.0  ;;  %v833_v58 = vpop.f32.mrf.mxu3 }
  0xe6   :  { %v834_v2 = vadd.f32 %v833_v58, %v192_v57 }
  0xe7   :  { %v924_v51 = vpack.c.bf16 %v922_v49, %v920_v47 }
  0xe8   :  { %v847_v61 = vpop.f32.mrf.mxu2 }
  0xe9   :  { %1066 = vmatmul.bf16.vlgmr.msrb.gmra.mxu1 %v924_v51  ;;  %v848_v7 = vadd.f32 %v847_v61, %v834_v2 }
  0xf5   :  { %v859_v59 = vpop.f32.mrf.mxu0 }
  0xf6   :  { %v860_v8 = vadd.f32 %v859_v59, %v846_v1 }
  0xf8   :  { %v873_v0 = vpop.f32.mrf.mxu1 }
  0xf9   :  { %v874_v11 = vadd.f32 %v873_v0, %v860_v8 }
  0xfd   :  { %v887_v3 = vpop.f32.mrf.mxu3  ;;  %v861_v5 = vpop.f32.mrf.mxu0 }
  0xfe   :  { %v862_v9 = vadd.f32 %v861_v5, %v848_v7  ;;  %v888_v54 = vadd.f32 %v887_v3, %v874_v11 }
 0x100   :  { %v901_v6 = vpop.f32.mrf.mxu2  ;;  %v875_v10 = vpop.f32.mrf.mxu1 }
 0x101   :  { %v876_v37 = vadd.f32 %v875_v10, %v862_v9  ;;  %v902_v44 = vadd.f32 %v901_v6, %v888_v54 }
 0x105   :  { %v889_v12 = vpop.f32.mrf.mxu3  ;;  %v915_v13 = vpop.f32.mrf.mxu0 }
 0x106   :  { %v890_v63 = vadd.f32 %v889_v12, %v876_v37  ;;  %v916_v15 = vadd.f32 %v915_v13, %v902_v44 }
 0x108   :  { %v903_v14 = vpop.f32.mrf.mxu2  ;;  %v921_v4 = vmax.f32 %v916_v15, 0.0 }
 0x109   :  { %v904_v16 = vadd.f32 %v903_v14, %v890_v63 }
 0x10d   :  { %v917_v48 = vpop.f32.mrf.mxu0 }
 0x10e   :  { %v918_v17 = vadd.f32 %v917_v48, %v904_v16 }
 0x110   :  { %v923_v18 = vmax.f32 %v918_v17, 0.0 }
 0x112   :  { %v925_v60 = vpack.c.bf16 %v923_v18, %v921_v4 }
 0x114   :  { %1080 = vmatmul.bf16.vlgmr.msrb.gmra.mxu3 %v925_v60 }
 0x166   :  { %v1067_v19 = vpop.f32.mrf.mxu1 }
 0x167   :  { %v1068_v23 = vadd.f32 %v1734_v21, %v1067_v19 }
 0x16e   :  { %v1069_v22 = vpop.f32.mrf.mxu1 }
 0x16f   :  { %v1070_v24 = vadd.f32 %v1734_v21, %v1069_v22 }
 0x197   :  { %v1081_v20 = vpop.f32.mrf.mxu3 }
 0x198   :  { %v1082_v26 = vadd.f32 %v1081_v20, %v1068_v23 }
 0x19f   :  { %v1083_v25 = vpop.f32.mrf.mxu3 }
 0x1a0   :  { %v1084_v27 = vadd.f32 %v1083_v25, %v1070_v24 }
 0x1a2   :  { %v1721_v28 = vpack.c.bf16 %v1084_v27, %v1082_v26 }
 0x1a4   :  { %1722 = vst [vmem:[#allocation10] sm:$0xff] %v1721_v28  }
 0x1a5   :  { %1093 = vsyncadd [#allocation4], 64  ;;  %s1096_s19 = sshll.u32 %s1963_s5, 4  ;;  %s1873_s20 = smov [#allocation10]   ;;  %s1097_s19 = int_to_ptr.hbm [resolvable:$true] %s1096_s19 }
 0x1a6   :  { %s1094_s21 = sshll.u32 %s1873_s20, 4  ;;  %s1095_s21 = int_to_ptr.vmem [resolvable:$true] %s1094_s21 }
 0x1a7   :  { %1102 = dma.vmem_to_hbm [thread:$0]  %s1095_s21, 64, %s1097_s19, [#allocation4], %s1871_s15, %s1871_s15, %s1872_s16  }
 0x1a8   :  { %1861 = dma.done.wait [#allocation4], 128  }
 0x1a9   :  { %1862 = vsyncadd [#allocation4], 4294967168 }
 0x1aa   :  { %1107 = vsyncpa [#allocation3], 1 }
 0x1ab   :  { %1108 = vsyncpa [#allocation6], 1 }
 0x1ac   :  { %1109 = vsyncpa [#allocation9], 1 }
 0x1ad   :  { %1110 = vsyncpa [#allocation4], 1 }

</bundles_post_ra>
